<compile_context>
chip_gen: v7x
topology: tpu7x:2x2x1
jax: 0.10.0
libtpu: 0.0.40
codegen_flags: <defaults>
</compile_context>

<pallas_src>
import functools

import jax
import jax.numpy as jnp
from jax.experimental import pallas as pl
from jax.experimental.pallas import tpu as pltpu

# BT.601 analog RGB -> YUV coefficients (same as util.py's rgb2yuv)
_Y = (0.299, 0.587, 0.114)
_U = (-0.14713, -0.28886, 0.436)
_V = (0.615, -0.51499, -0.10001)

_LANES = 128            # lane width of a vreg
_MAX_TILE_ROWS = 2048   # 3ch * 2048 * 128 * f32 = 3 MiB/block
_SUB_ROWS = 32          # in-kernel sub-chunk: bounds live vregs (no spills)
_VMEM_LIMIT = 32 * 1024 * 1024


def _cdiv(a, b):
    return -(-a // b)


def _stats_kernel(x_ref, stats_ref, *, sub, n_sub):
    """Pass 1: lane-wise running minima of [min x, -max x, min t_c, -max t_c] (8 rows)."""
    rb = pl.program_id(1)  # reduction axis (row-blocks)

    acc = None
    for i in range(n_sub):                       # static trip count, static offsets
        lo = i * sub
        r = x_ref[0, 0, lo:lo + sub, :].astype(jnp.float32)   # dense (sub, 128) tiles
        g = x_ref[0, 1, lo:lo + sub, :].astype(jnp.float32)
        b = x_ref[0, 2, lo:lo + sub, :].astype(jnp.float32)

        cur = []
        cmin = jnp.minimum(jnp.minimum(r, g), b)               # global min/max of x
        cur.append(jnp.min(cmin, axis=0, keepdims=True))
        cmax = jnp.maximum(jnp.maximum(r, g), b)
        cur.append(-jnp.max(cmax, axis=0, keepdims=True))
        # raw (un-normalized) channel mixes; reduce each immediately (short live ranges)
        for a0, a1, a2 in (_Y, _U, _V):
            t = a0 * r + a1 * g + a2 * b
            cur.append(jnp.min(t, axis=0, keepdims=True))
            cur.append(-jnp.max(t, axis=0, keepdims=True))
        acc = cur if acc is None else [jnp.minimum(p, q) for p, q in zip(acc, cur)]

    # stats block (1, 8, 128) stays resident across the rb axis (accumulator pattern).
    @pl.when(rb == 0)
    def _():
        for k in range(8):
            stats_ref[0, k:k + 1, :] = acc[k]

    @pl.when(rb > 0)
    def _():
        for k in range(8):
            stats_ref[0, k:k + 1, :] = jnp.minimum(stats_ref[0, k:k + 1, :], acc[k])


def _apply_kernel(p_ref, x_ref, o_ref, *, sub, n_sub):
    """Pass 2: out_c = coef[c,0]*r + coef[c,1]*g + coef[c,2]*b + bias[c]."""
    # p_ref: (12, 128) f32; each row is one folded scalar broadcast across lanes
    # (rows 0..8 = coef row-major 3x3, rows 9..11 = per-channel bias).  Hoisted.
    c = [p_ref[k:k + 1, :] for k in range(9)]          # (1, 128) each
    d = [p_ref[9 + k:10 + k, :] for k in range(3)]
    odt = o_ref.dtype
    for i in range(n_sub):                             # static trip count, static offsets
        lo = i * sub
        r = x_ref[0, 0, lo:lo + sub, :].astype(jnp.float32)
        g = x_ref[0, 1, lo:lo + sub, :].astype(jnp.float32)
        b = x_ref[0, 2, lo:lo + sub, :].astype(jnp.float32)
        # lane-dense (sub, 128) unmasked stores, native output dtype
        o_ref[0, 0, lo:lo + sub, :] = (c[0] * r + c[1] * g + c[2] * b + d[0]).astype(odt)
        o_ref[0, 1, lo:lo + sub, :] = (c[3] * r + c[4] * g + c[5] * b + d[1]).astype(odt)
        o_ref[0, 2, lo:lo + sub, :] = (c[6] * r + c[7] * g + c[8] * b + d[2]).astype(odt)


@jax.jit
def rgb2yuv_layer(img):
    """img: (N, 3, H, W) float array (NCHW, same layout as the PyTorch module)."""
    N, C, H, W = img.shape
    assert C == 3, "RGB2YUVLayer expects 3 channels"
    if not jnp.issubdtype(img.dtype, jnp.floating):
        img = img.astype(jnp.float32)   # matches torch true-division promotion
    dt = img.dtype
    P = H * W
    x = img.reshape(N, C, P)            # zero-copy (no transpose, no dtype copy)

    # ---- tiling: lane-dense (rows, 128) view of each channel plane ----------
    r_needed = _cdiv(P, _LANES)
    if r_needed <= _SUB_ROWS:
        tile_rows, rb_blocks, sub = r_needed, 1, r_needed
    else:
        rb_blocks = _cdiv(r_needed, _MAX_TILE_ROWS)
        tile_rows = _cdiv(_cdiv(r_needed, rb_blocks), _SUB_ROWS) * _SUB_ROWS
        sub = _SUB_ROWS
    n_sub = tile_rows // sub
    r_total = rb_blocks * tile_rows
    p_pad = r_total * _LANES
    if p_pad != P:
        # Edge-pad the pixel axis: padded pixels replicate an existing pixel of the same
        # image/channel, so neither global min/max of x nor min/max of the raw channel
        # mixes change.  (No pad at all when H*W is already a multiple of the tile.)
        x = jnp.pad(x, ((0, 0), (0, 0), (0, p_pad - P)), mode="edge")
    x4 = x.reshape(N, C, r_total, _LANES)               # zero-copy

    blk = (1, C, tile_rows, _LANES)
    idx = lambda n, rb: (n, 0, rb, 0)

    # ---- pass 1: tiled reduction --------------------------------------------
    stats = pl.pallas_call(
        functools.partial(_stats_kernel, sub=sub, n_sub=n_sub),
        out_shape=jax.ShapeDtypeStruct((N, 8, _LANES), jnp.float32),
        grid=(N, rb_blocks),
        in_specs=[pl.BlockSpec(blk, idx)],
        out_specs=pl.BlockSpec((1, 8, _LANES), lambda n, rb: (n, 0, 0)),
        compiler_params=pltpu.CompilerParams(
            dimension_semantics=("parallel", "arbitrary"),
            vmem_limit_bytes=_VMEM_LIMIT),
    )(x4)

    # ---- tiny scalar math: fold both normalizations + 3x3 mix into one affine
    s = jnp.min(stats, axis=(0, 2))                     # (8,) final combine (trivial)
    xmin, xmax = s[0], -s[1]                            # global min/max of img
    tmin = jnp.stack([s[2], s[4], s[6]])                # per-channel min of A_c . x
    tmax = -jnp.stack([s[3], s[5], s[7]])               # per-channel max of A_c . x
    A = jnp.asarray([_Y, _U, _V], dtype=jnp.float32)    # (3, 3)
    rowsum = jnp.sum(A, axis=1)                         # (3,)
    rng0 = xmax - xmin
    s0 = 255.0 / rng0                                   # NaN/Inf if constant image (matches torch)
    off = s0 * xmin * rowsum
    m1 = jnp.min(s0 * tmin - off)                       # min/max of normalized YUV, algebraically
    M1 = jnp.max(s0 * tmax - off)
    s1 = rng0 / (M1 - m1)
    K = s0 * s1
    coef = (K * A).reshape(9)
    bias = -K * xmin * rowsum - s1 * m1 + xmin          # (3,)
    params = jnp.concatenate([coef, bias]).astype(jnp.float32)      # (12,)
    params = jnp.broadcast_to(params[:, None], (12, _LANES))        # lane-broadcast rows

    # ---- pass 2: tiled affine transform --------------------------------------
    out4 = pl.pallas_call(
        functools.partial(_apply_kernel, sub=sub, n_sub=n_sub),
        out_shape=jax.ShapeDtypeStruct((N, C, r_total, _LANES), dt),
        grid=(N, rb_blocks),
        in_specs=[pl.BlockSpec((12, _LANES), lambda n, rb: (0, 0)),
                  pl.BlockSpec(blk, idx)],
        out_specs=pl.BlockSpec(blk, idx),
        compiler_params=pltpu.CompilerParams(
            dimension_semantics=("parallel", "parallel"),
            vmem_limit_bytes=_VMEM_LIMIT),
    )(params, x4)

    out = out4.reshape(N, C, p_pad)
    if p_pad != P:
        out = out[:, :, :P]
    return out.reshape(N, C, H, W)                      # zero-copy when unpadded


def _reference(img):
    """Pure-JAX reference of the PyTorch forward (f32), for verification."""
    img = img.astype(jnp.float32)
    m0 = jnp.min(img)
    M0 = jnp.max(img)
    x = (img - m0) / (M0 - m0) * 255.0
    r, g, b = x[:, 0], x[:, 1], x[:, 2]
    y = _Y[0] * r + _Y[1] * g + _Y[2] * b
    u = _U[0] * r + _U[1] * g + _U[2] * b
    v = _V[0] * r + _V[1] * g + _V[2] * b
    yuv = jnp.stack([y, u, v], axis=1)
    m1 = jnp.min(yuv)
    M1 = jnp.max(yuv)
    return (yuv - m1) / (M1 - m1) * (M0 - m0) + m0


if __name__ == "__main__":
    key = jax.random.PRNGKey(0)

    cases = [
        ((2, 3, 16, 16), jnp.float32, 1e-4),    # primary small case (single block, no padding)
        ((1, 3, 10, 10), jnp.float32, 1e-4),    # pixel-axis edge padding
        ((1, 3, 96, 100), jnp.float32, 1e-4),   # in-kernel sub-chunk loop (n_sub > 1) + padding
        ((1, 3, 512, 520), jnp.float32, 1e-4),  # multiple row-blocks -> cross-block reduction path
        ((1, 3, 64, 128), jnp.bfloat16, 2e-2),  # native low-precision I/O path
    ]
    for i, (shp, dtype, atol) in enumerate(cases):
        k = jax.random.fold_in(key, i)
        img = jax.random.uniform(k, shp, dtype=jnp.float32, minval=-1.0, maxval=1.0).astype(dtype)
        out = jax.block_until_ready(rgb2yuv_layer(img))
        ref = jax.block_until_ready(_reference(img))
        assert out.shape == img.shape and out.dtype == img.dtype
        assert jnp.allclose(out.astype(jnp.float32), ref, atol=atol, rtol=atol), \
            f"mismatch for shape {shp} dtype {dtype}"

    print("KERNEL_OK")
</pallas_src>

<mosaic_0001>
module attributes {stable_mosaic.version = 11 : i64} {
  func.func @_stats_kernel(%arg0: i32, %arg1: i32, %arg2: memref<1x3x2x128xf32, #tpu.memory_space<vmem>>, %arg3: memref<1x8x128xf32, #tpu.memory_space<vmem>>) attributes {dimension_semantics = [#tpu.dimension_semantics<parallel>, #tpu.dimension_semantics<arbitrary>], iteration_bounds = array<i64: 2, 1>, scalar_prefetch = 0 : i64, scratch_operands = 0 : i64, tpu.core_type = #tpu.core_type<tc>, window_params = [{transform_indices = @transform_0, window_bounds = array<i64: 1, 3, 2, 128>}, {transform_indices = @transform_1, window_bounds = array<i64: 1, 8, 128>}]} {
    %c0 = arith.constant 0 : index
    %c0_0 = arith.constant 0 : index
    %c0_1 = arith.constant 0 : index
    %c0_2 = arith.constant 0 : index
    %0 = vector.load %arg2[%c0, %c0_0, %c0_1, %c0_2] : memref<1x3x2x128xf32, #tpu.memory_space<vmem>>, vector<1x1x2x128xf32>
    %1 = vector.shape_cast %0 : vector<1x1x2x128xf32> to vector<2x128xf32>
    %c0_3 = arith.constant 0 : index
    %c1 = arith.constant 1 : index
    %c0_4 = arith.constant 0 : index
    %c0_5 = arith.constant 0 : index
    %2 = vector.load %arg2[%c0_3, %c1, %c0_4, %c0_5] : memref<1x3x2x128xf32, #tpu.memory_space<vmem>>, vector<1x1x2x128xf32>
    %3 = vector.shape_cast %2 : vector<1x1x2x128xf32> to vector<2x128xf32>
    %c0_6 = arith.constant 0 : index
    %c2 = arith.constant 2 : index
    %c0_7 = arith.constant 0 : index
    %c0_8 = arith.constant 0 : index
    %4 = vector.load %arg2[%c0_6, %c2, %c0_7, %c0_8] : memref<1x3x2x128xf32, #tpu.memory_space<vmem>>, vector<1x1x2x128xf32>
    %5 = vector.shape_cast %4 : vector<1x1x2x128xf32> to vector<2x128xf32>
    %6 = arith.minimumf %1, %3 : vector<2x128xf32>
    %7 = arith.minimumf %6, %5 : vector<2x128xf32>
    %cst = arith.constant dense<0x7F800000> : vector<128xf32>
    %8 = vector.multi_reduction <minimumf>, %7, %cst [0] : vector<2x128xf32> to vector<128xf32>
    %9 = vector.shape_cast %8 : vector<128xf32> to vector<1x128xf32>
    %10 = arith.maximumf %1, %3 : vector<2x128xf32>
    %11 = arith.maximumf %10, %5 : vector<2x128xf32>
    %cst_9 = arith.constant dense<0xFF800000> : vector<128xf32>
    %12 = vector.multi_reduction <maximumf>, %11, %cst_9 [0] : vector<2x128xf32> to vector<128xf32>
    %13 = vector.shape_cast %12 : vector<128xf32> to vector<1x128xf32>
    %cst_10 = arith.constant 0.000000e+00 : f32
    %14 = vector.broadcast %cst_10 : f32 to vector<1x128xf32>
    %15 = arith.subf %14, %13 : vector<1x128xf32>
    %cst_11 = arith.constant 2.990000e-01 : f32
    %16 = vector.broadcast %cst_11 : f32 to vector<2x128xf32>
    %17 = arith.mulf %16, %1 : vector<2x128xf32>
    %cst_12 = arith.constant 5.870000e-01 : f32
    %18 = vector.broadcast %cst_12 : f32 to vector<2x128xf32>
    %19 = arith.mulf %18, %3 : vector<2x128xf32>
    %20 = arith.addf %17, %19 : vector<2x128xf32>
    %cst_13 = arith.constant 1.140000e-01 : f32
    %21 = vector.broadcast %cst_13 : f32 to vector<2x128xf32>
    %22 = arith.mulf %21, %5 : vector<2x128xf32>
    %23 = arith.addf %20, %22 : vector<2x128xf32>
    %cst_14 = arith.constant dense<0x7F800000> : vector<128xf32>
    %24 = vector.multi_reduction <minimumf>, %23, %cst_14 [0] : vector<2x128xf32> to vector<128xf32>
    %25 = vector.shape_cast %24 : vector<128xf32> to vector<1x128xf32>
    %cst_15 = arith.constant dense<0xFF800000> : vector<128xf32>
    %26 = vector.multi_reduction <maximumf>, %23, %cst_15 [0] : vector<2x128xf32> to vector<128xf32>
    %27 = vector.shape_cast %26 : vector<128xf32> to vector<1x128xf32>
    %cst_16 = arith.constant 0.000000e+00 : f32
    %28 = vector.broadcast %cst_16 : f32 to vector<1x128xf32>
    %29 = arith.subf %28, %27 : vector<1x128xf32>
    %cst_17 = arith.constant -1.471300e-01 : f32
    %30 = vector.broadcast %cst_17 : f32 to vector<2x128xf32>
    %31 = arith.mulf %30, %1 : vector<2x128xf32>
    %cst_18 = arith.constant -2.888600e-01 : f32
    %32 = vector.broadcast %cst_18 : f32 to vector<2x128xf32>
    %33 = arith.mulf %32, %3 : vector<2x128xf32>
    %34 = arith.addf %31, %33 : vector<2x128xf32>
    %cst_19 = arith.constant 4.360000e-01 : f32
    %35 = vector.broadcast %cst_19 : f32 to vector<2x128xf32>
    %36 = arith.mulf %35, %5 : vector<2x128xf32>
    %37 = arith.addf %34, %36 : vector<2x128xf32>
    %cst_20 = arith.constant dense<0x7F800000> : vector<128xf32>
    %38 = vector.multi_reduction <minimumf>, %37, %cst_20 [0] : vector<2x128xf32> to vector<128xf32>
    %39 = vector.shape_cast %38 : vector<128xf32> to vector<1x128xf32>
    %cst_21 = arith.constant dense<0xFF800000> : vector<128xf32>
    %40 = vector.multi_reduction <maximumf>, %37, %cst_21 [0] : vector<2x128xf32> to vector<128xf32>
    %41 = vector.shape_cast %40 : vector<128xf32> to vector<1x128xf32>
    %cst_22 = arith.constant 0.000000e+00 : f32
    %42 = vector.broadcast %cst_22 : f32 to vector<1x128xf32>
    %43 = arith.subf %42, %41 : vector<1x128xf32>
    %cst_23 = arith.constant 6.150000e-01 : f32
    %44 = vector.broadcast %cst_23 : f32 to vector<2x128xf32>
    %45 = arith.mulf %44, %1 : vector<2x128xf32>
    %cst_24 = arith.constant -5.149900e-01 : f32
    %46 = vector.broadcast %cst_24 : f32 to vector<2x128xf32>
    %47 = arith.mulf %46, %3 : vector<2x128xf32>
    %48 = arith.addf %45, %47 : vector<2x128xf32>
    %cst_25 = arith.constant -1.000100e-01 : f32
    %49 = vector.broadcast %cst_25 : f32 to vector<2x128xf32>
    %50 = arith.mulf %49, %5 : vector<2x128xf32>
    %51 = arith.addf %48, %50 : vector<2x128xf32>
    %cst_26 = arith.constant dense<0x7F800000> : vector<128xf32>
    %52 = vector.multi_reduction <minimumf>, %51, %cst_26 [0] : vector<2x128xf32> to vector<128xf32>
    %53 = vector.shape_cast %52 : vector<128xf32> to vector<1x128xf32>
    %cst_27 = arith.constant dense<0xFF800000> : vector<128xf32>
    %54 = vector.multi_reduction <maximumf>, %51, %cst_27 [0] : vector<2x128xf32> to vector<128xf32>
    %55 = vector.shape_cast %54 : vector<128xf32> to vector<1x128xf32>
    %cst_28 = arith.constant 0.000000e+00 : f32
    %56 = vector.broadcast %cst_28 : f32 to vector<1x128xf32>
    %57 = arith.subf %56, %55 : vector<1x128xf32>
    %c0_i32 = arith.constant 0 : i32
    %58 = arith.cmpi eq, %arg1, %c0_i32 : i32
    %59 = arith.extui %58 : i1 to i32
    %c0_i32_29 = arith.constant 0 : i32
    %60 = arith.cmpi ne, %59, %c0_i32_29 : i32
    scf.if %60 {
      %c0_32 = arith.constant 0 : index
      %c0_33 = arith.constant 0 : index
      %c0_34 = arith.constant 0 : index
      %64 = vector.load %arg3[%c0_32, %c0_33, %c0_34] : memref<1x8x128xf32, #tpu.memory_space<vmem>>, vector<1x1x128xf32>
      %65 = vector.shape_cast %64 : vector<1x1x128xf32> to vector<1x128xf32>
      %66 = vector.shape_cast %9 : vector<1x128xf32> to vector<1x1x128xf32>
      tpu.vector_store %arg3[%c0_32, %c0_33, %c0_34], %66 {strides = array<i32>} : memref<1x8x128xf32, #tpu.memory_space<vmem>>, vector<1x1x128xf32>,
      %c0_35 = arith.constant 0 : index
      %c1_36 = arith.constant 1 : index
      %c0_37 = arith.constant 0 : index
      %67 = vector.load %arg3[%c0_35, %c1_36, %c0_37] : memref<1x8x128xf32, #tpu.memory_space<vmem>>, vector<1x1x128xf32>
      %68 = vector.shape_cast %67 : vector<1x1x128xf32> to vector<1x128xf32>
      %69 = vector.shape_cast %15 : vector<1x128xf32> to vector<1x1x128xf32>
      tpu.vector_store %arg3[%c0_35, %c1_36, %c0_37], %69 {strides = array<i32>} : memref<1x8x128xf32, #tpu.memory_space<vmem>>, vector<1x1x128xf32>,
      %c0_38 = arith.constant 0 : index
      %c2_39 = arith.constant 2 : index
      %c0_40 = arith.constant 0 : index
      %70 = vector.load %arg3[%c0_38, %c2_39, %c0_40] : memref<1x8x128xf32, #tpu.memory_space<vmem>>, vector<1x1x128xf32>
      %71 = vector.shape_cast %70 : vector<1x1x128xf32> to vector<1x128xf32>
      %72 = vector.shape_cast %25 : vector<1x128xf32> to vector<1x1x128xf32>
      tpu.vector_store %arg3[%c0_38, %c2_39, %c0_40], %72 {strides = array<i32>} : memref<1x8x128xf32, #tpu.memory_space<vmem>>, vector<1x1x128xf32>,
      %c0_41 = arith.constant 0 : index
      %c3 = arith.constant 3 : index
      %c0_42 = arith.constant 0 : index
      %73 = vector.load %arg3[%c0_41, %c3, %c0_42] : memref<1x8x128xf32, #tpu.memory_space<vmem>>, vector<1x1x128xf32>
      %74 = vector.shape_cast %73 : vector<1x1x128xf32> to vector<1x128xf32>
      %75 = vector.shape_cast %29 : vector<1x128xf32> to vector<1x1x128xf32>
      tpu.vector_store %arg3[%c0_41, %c3, %c0_42], %75 {strides = array<i32>} : memref<1x8x128xf32, #tpu.memory_space<vmem>>, vector<1x1x128xf32>,
      %c0_43 = arith.constant 0 : index
      %c4 = arith.constant 4 : index
      %c0_44 = arith.constant 0 : index
      %76 = vector.load %arg3[%c0_43, %c4, %c0_44] : memref<1x8x128xf32, #tpu.memory_space<vmem>>, vector<1x1x128xf32>
      %77 = vector.shape_cast %76 : vector<1x1x128xf32> to vector<1x128xf32>
      %78 = vector.shape_cast %39 : vector<1x128xf32> to vector<1x1x128xf32>
      tpu.vector_store %arg3[%c0_43, %c4, %c0_44], %78 {strides = array<i32>} : memref<1x8x128xf32, #tpu.memory_space<vmem>>, vector<1x1x128xf32>,
      %c0_45 = arith.constant 0 : index
      %c5 = arith.constant 5 : index
      %c0_46 = arith.constant 0 : index
      %79 = vector.load %arg3[%c0_45, %c5, %c0_46] : memref<1x8x128xf32, #tpu.memory_space<vmem>>, vector<1x1x128xf32>
      %80 = vector.shape_cast %79 : vector<1x1x128xf32> to vector<1x128xf32>
      %81 = vector.shape_cast %43 : vector<1x128xf32> to vector<1x1x128xf32>
      tpu.vector_store %arg3[%c0_45, %c5, %c0_46], %81 {strides = array<i32>} : memref<1x8x128xf32, #tpu.memory_space<vmem>>, vector<1x1x128xf32>,
      %c0_47 = arith.constant 0 : index
      %c6 = arith.constant 6 : index
      %c0_48 = arith.constant 0 : index
      %82 = vector.load %arg3[%c0_47, %c6, %c0_48] : memref<1x8x128xf32, #tpu.memory_space<vmem>>, vector<1x1x128xf32>
      %83 = vector.shape_cast %82 : vector<1x1x128xf32> to vector<1x128xf32>
      %84 = vector.shape_cast %53 : vector<1x128xf32> to vector<1x1x128xf32>
      tpu.vector_store %arg3[%c0_47, %c6, %c0_48], %84 {strides = array<i32>} : memref<1x8x128xf32, #tpu.memory_space<vmem>>, vector<1x1x128xf32>,
      %c0_49 = arith.constant 0 : index
      %c7 = arith.constant 7 : index
      %c0_50 = arith.constant 0 : index
      %85 = vector.load %arg3[%c0_49, %c7, %c0_50] : memref<1x8x128xf32, #tpu.memory_space<vmem>>, vector<1x1x128xf32>
      %86 = vector.shape_cast %85 : vector<1x1x128xf32> to vector<1x128xf32>
      %87 = vector.shape_cast %57 : vector<1x128xf32> to vector<1x1x128xf32>
      tpu.vector_store %arg3[%c0_49, %c7, %c0_50], %87 {strides = array<i32>} : memref<1x8x128xf32, #tpu.memory_space<vmem>>, vector<1x1x128xf32>,
    } else {
    }
    %c0_i32_30 = arith.constant 0 : i32
    %61 = arith.cmpi sgt, %arg1, %c0_i32_30 : i32
    %62 = arith.extui %61 : i1 to i32
    %c0_i32_31 = arith.constant 0 : i32
    %63 = arith.cmpi ne, %62, %c0_i32_31 : i32
    scf.if %63 {
      %c0_32 = arith.constant 0 : index
      %c0_33 = arith.constant 0 : index
      %c0_34 = arith.constant 0 : index
      %64 = vector.load %arg3[%c0_32, %c0_33, %c0_34] : memref<1x8x128xf32, #tpu.memory_space<vmem>>, vector<1x1x128xf32>
      %65 = vector.shape_cast %64 : vector<1x1x128xf32> to vector<1x128xf32>
      %66 = arith.minimumf %65, %9 : vector<1x128xf32>
      %c0_35 = arith.constant 0 : index
      %c0_36 = arith.constant 0 : index
      %c0_37 = arith.constant 0 : index
      %67 = vector.load %arg3[%c0_35, %c0_36, %c0_37] : memref<1x8x128xf32, #tpu.memory_space<vmem>>, vector<1x1x128xf32>
      %68 = vector.shape_cast %67 : vector<1x1x128xf32> to vector<1x128xf32>
      %69 = vector.shape_cast %66 : vector<1x128xf32> to vector<1x1x128xf32>
      tpu.vector_store %arg3[%c0_35, %c0_36, %c0_37], %69 {strides = array<i32>} : memref<1x8x128xf32, #tpu.memory_space<vmem>>, vector<1x1x128xf32>,
      %c0_38 = arith.constant 0 : index
      %c1_39 = arith.constant 1 : index
      %c0_40 = arith.constant 0 : index
      %70 = vector.load %arg3[%c0_38, %c1_39, %c0_40] : memref<1x8x128xf32, #tpu.memory_space<vmem>>, vector<1x1x128xf32>
      %71 = vector.shape_cast %70 : vector<1x1x128xf32> to vector<1x128xf32>
      %72 = arith.minimumf %71, %15 : vector<1x128xf32>
      %c0_41 = arith.constant 0 : index
      %c1_42 = arith.constant 1 : index
      %c0_43 = arith.constant 0 : index
      %73 = vector.load %arg3[%c0_41, %c1_42, %c0_43] : memref<1x8x128xf32, #tpu.memory_space<vmem>>, vector<1x1x128xf32>
      %74 = vector.shape_cast %73 : vector<1x1x128xf32> to vector<1x128xf32>
      %75 = vector.shape_cast %72 : vector<1x128xf32> to vector<1x1x128xf32>
      tpu.vector_store %arg3[%c0_41, %c1_42, %c0_43], %75 {strides = array<i32>} : memref<1x8x128xf32, #tpu.memory_space<vmem>>, vector<1x1x128xf32>,
      %c0_44 = arith.constant 0 : index
      %c2_45 = arith.constant 2 : index
      %c0_46 = arith.constant 0 : index
      %76 = vector.load %arg3[%c0_44, %c2_45, %c0_46] : memref<1x8x128xf32, #tpu.memory_space<vmem>>, vector<1x1x128xf32>
      %77 = vector.shape_cast %76 : vector<1x1x128xf32> to vector<1x128xf32>
      %78 = arith.minimumf %77, %25 : vector<1x128xf32>
      %c0_47 = arith.constant 0 : index
      %c2_48 = arith.constant 2 : index
      %c0_49 = arith.constant 0 : index
      %79 = vector.load %arg3[%c0_47, %c2_48, %c0_49] : memref<1x8x128xf32, #tpu.memory_space<vmem>>, vector<1x1x128xf32>
      %80 = vector.shape_cast %79 : vector<1x1x128xf32> to vector<1x128xf32>
      %81 = vector.shape_cast %78 : vector<1x128xf32> to vector<1x1x128xf32>
      tpu.vector_store %arg3[%c0_47, %c2_48, %c0_49], %81 {strides = array<i32>} : memref<1x8x128xf32, #tpu.memory_space<vmem>>, vector<1x1x128xf32>,
      %c0_50 = arith.constant 0 : index
      %c3 = arith.constant 3 : index
      %c0_51 = arith.constant 0 : index
      %82 = vector.load %arg3[%c0_50, %c3, %c0_51] : memref<1x8x128xf32, #tpu.memory_space<vmem>>, vector<1x1x128xf32>
      %83 = vector.shape_cast %82 : vector<1x1x128xf32> to vector<1x128xf32>
      %84 = arith.minimumf %83, %29 : vector<1x128xf32>
      %c0_52 = arith.constant 0 : index
      %c3_53 = arith.constant 3 : index
      %c0_54 = arith.constant 0 : index
      %85 = vector.load %arg3[%c0_52, %c3_53, %c0_54] : memref<1x8x128xf32, #tpu.memory_space<vmem>>, vector<1x1x128xf32>
      %86 = vector.shape_cast %85 : vector<1x1x128xf32> to vector<1x128xf32>
      %87 = vector.shape_cast %84 : vector<1x128xf32> to vector<1x1x128xf32>
      tpu.vector_store %arg3[%c0_52, %c3_53, %c0_54], %87 {strides = array<i32>} : memref<1x8x128xf32, #tpu.memory_space<vmem>>, vector<1x1x128xf32>,
      %c0_55 = arith.constant 0 : index
      %c4 = arith.constant 4 : index
      %c0_56 = arith.constant 0 : index
      %88 = vector.load %arg3[%c0_55, %c4, %c0_56] : memref<1x8x128xf32, #tpu.memory_space<vmem>>, vector<1x1x128xf32>
      %89 = vector.shape_cast %88 : vector<1x1x128xf32> to vector<1x128xf32>
      %90 = arith.minimumf %89, %39 : vector<1x128xf32>
      %c0_57 = arith.constant 0 : index
      %c4_58 = arith.constant 4 : index
      %c0_59 = arith.constant 0 : index
      %91 = vector.load %arg3[%c0_57, %c4_58, %c0_59] : memref<1x8x128xf32, #tpu.memory_space<vmem>>, vector<1x1x128xf32>
      %92 = vector.shape_cast %91 : vector<1x1x128xf32> to vector<1x128xf32>
      %93 = vector.shape_cast %90 : vector<1x128xf32> to vector<1x1x128xf32>
      tpu.vector_store %arg3[%c0_57, %c4_58, %c0_59], %93 {strides = array<i32>} : memref<1x8x128xf32, #tpu.memory_space<vmem>>, vector<1x1x128xf32>,
      %c0_60 = arith.constant 0 : index
      %c5 = arith.constant 5 : index
      %c0_61 = arith.constant 0 : index
      %94 = vector.load %arg3[%c0_60, %c5, %c0_61] : memref<1x8x128xf32, #tpu.memory_space<vmem>>, vector<1x1x128xf32>
      %95 = vector.shape_cast %94 : vector<1x1x128xf32> to vector<1x128xf32>
      %96 = arith.minimumf %95, %43 : vector<1x128xf32>
      %c0_62 = arith.constant 0 : index
      %c5_63 = arith.constant 5 : index
      %c0_64 = arith.constant 0 : index
      %97 = vector.load %arg3[%c0_62, %c5_63, %c0_64] : memref<1x8x128xf32, #tpu.memory_space<vmem>>, vector<1x1x128xf32>
      %98 = vector.shape_cast %97 : vector<1x1x128xf32> to vector<1x128xf32>
      %99 = vector.shape_cast %96 : vector<1x128xf32> to vector<1x1x128xf32>
      tpu.vector_store %arg3[%c0_62, %c5_63, %c0_64], %99 {strides = array<i32>} : memref<1x8x128xf32, #tpu.memory_space<vmem>>, vector<1x1x128xf32>,
      %c0_65 = arith.constant 0 : index
      %c6 = arith.constant 6 : index
      %c0_66 = arith.constant 0 : index
      %100 = vector.load %arg3[%c0_65, %c6, %c0_66] : memref<1x8x128xf32, #tpu.memory_space<vmem>>, vector<1x1x128xf32>
      %101 = vector.shape_cast %100 : vector<1x1x128xf32> to vector<1x128xf32>
      %102 = arith.minimumf %101, %53 : vector<1x128xf32>
      %c0_67 = arith.constant 0 : index
      %c6_68 = arith.constant 6 : index
      %c0_69 = arith.constant 0 : index
      %103 = vector.load %arg3[%c0_67, %c6_68, %c0_69] : memref<1x8x128xf32, #tpu.memory_space<vmem>>, vector<1x1x128xf32>
      %104 = vector.shape_cast %103 : vector<1x1x128xf32> to vector<1x128xf32>
      %105 = vector.shape_cast %102 : vector<1x128xf32> to vector<1x1x128xf32>
      tpu.vector_store %arg3[%c0_67, %c6_68, %c0_69], %105 {strides = array<i32>} : memref<1x8x128xf32, #tpu.memory_space<vmem>>, vector<1x1x128xf32>,
      %c0_70 = arith.constant 0 : index
      %c7 = arith.constant 7 : index
      %c0_71 = arith.constant 0 : index
      %106 = vector.load %arg3[%c0_70, %c7, %c0_71] : memref<1x8x128xf32, #tpu.memory_space<vmem>>, vector<1x1x128xf32>
      %107 = vector.shape_cast %106 : vector<1x1x128xf32> to vector<1x128xf32>
      %108 = arith.minimumf %107, %57 : vector<1x128xf32>
      %c0_72 = arith.constant 0 : index
      %c7_73 = arith.constant 7 : index
      %c0_74 = arith.constant 0 : index
      %109 = vector.load %arg3[%c0_72, %c7_73, %c0_74] : memref<1x8x128xf32, #tpu.memory_space<vmem>>, vector<1x1x128xf32>
      %110 = vector.shape_cast %109 : vector<1x1x128xf32> to vector<1x128xf32>
      %111 = vector.shape_cast %108 : vector<1x128xf32> to vector<1x1x128xf32>
      tpu.vector_store %arg3[%c0_72, %c7_73, %c0_74], %111 {strides = array<i32>} : memref<1x8x128xf32, #tpu.memory_space<vmem>>, vector<1x1x128xf32>,
    } else {
    }
    return
  }
  func.func @transform_0(%arg0: i32, %arg1: i32) -> (i32, i32, i32, i32) {
    %c0_i32 = arith.constant 0 : i32
    %c0_i32_0 = arith.constant 0 : i32
    %c0_i32_1 = arith.constant 0 : i32
    return %arg0, %c0_i32, %arg1, %c0_i32_0 : i32, i32, i32, i32
  }
  func.func @transform_1(%arg0: i32, %arg1: i32) -> (i32, i32, i32) {
    %c0_i32 = arith.constant 0 : i32
    %c0_i32_0 = arith.constant 0 : i32
    %c0_i32_1 = arith.constant 0 : i32
    return %arg0, %c0_i32, %c0_i32_0 : i32, i32, i32
  }
}

module attributes {stable_mosaic.version = 11 : i64} {
  func.func @_apply_kernel(%arg0: i32, %arg1: i32, %arg2: memref<12x128xf32, #tpu.memory_space<vmem>>, %arg3: memref<1x3x2x128xf32, #tpu.memory_space<vmem>>, %arg4: memref<1x3x2x128xf32, #tpu.memory_space<vmem>>) attributes {dimension_semantics = [#tpu.dimension_semantics<parallel>, #tpu.dimension_semantics<parallel>], iteration_bounds = array<i64: 2, 1>, scalar_prefetch = 0 : i64, scratch_operands = 0 : i64, tpu.core_type = #tpu.core_type<tc>, window_params = [{pipeline_mode = #tpu.pipeline_mode<synchronous>, transform_indices = @transform_0, window_bounds = array<i64: 12, 128>}, {transform_indices = @transform_1, window_bounds = array<i64: 1, 3, 2, 128>}, {transform_indices = @transform_2, window_bounds = array<i64: 1, 3, 2, 128>}]} {
    %c0 = arith.constant 0 : index
    %c0_0 = arith.constant 0 : index
    %0 = vector.load %arg2[%c0, %c0_0] : memref<12x128xf32, #tpu.memory_space<vmem>>, vector<1x128xf32>
    %c1 = arith.constant 1 : index
    %c0_1 = arith.constant 0 : index
    %1 = vector.load %arg2[%c1, %c0_1] : memref<12x128xf32, #tpu.memory_space<vmem>>, vector<1x128xf32>
    %c2 = arith.constant 2 : index
    %c0_2 = arith.constant 0 : index
    %2 = vector.load %arg2[%c2, %c0_2] : memref<12x128xf32, #tpu.memory_space<vmem>>, vector<1x128xf32>
    %c3 = arith.constant 3 : index
    %c0_3 = arith.constant 0 : index
    %3 = vector.load %arg2[%c3, %c0_3] : memref<12x128xf32, #tpu.memory_space<vmem>>, vector<1x128xf32>
    %c4 = arith.constant 4 : index
    %c0_4 = arith.constant 0 : index
    %4 = vector.load %arg2[%c4, %c0_4] : memref<12x128xf32, #tpu.memory_space<vmem>>, vector<1x128xf32>
    %c5 = arith.constant 5 : index
    %c0_5 = arith.constant 0 : index
    %5 = vector.load %arg2[%c5, %c0_5] : memref<12x128xf32, #tpu.memory_space<vmem>>, vector<1x128xf32>
    %c6 = arith.constant 6 : index
    %c0_6 = arith.constant 0 : index
    %6 = vector.load %arg2[%c6, %c0_6] : memref<12x128xf32, #tpu.memory_space<vmem>>, vector<1x128xf32>
    %c7 = arith.constant 7 : index
    %c0_7 = arith.constant 0 : index
    %7 = vector.load %arg2[%c7, %c0_7] : memref<12x128xf32, #tpu.memory_space<vmem>>, vector<1x128xf32>
    %c8 = arith.constant 8 : index
    %c0_8 = arith.constant 0 : index
    %8 = vector.load %arg2[%c8, %c0_8] : memref<12x128xf32, #tpu.memory_space<vmem>>, vector<1x128xf32>
    %c9 = arith.constant 9 : index
    %c0_9 = arith.constant 0 : index
    %9 = vector.load %arg2[%c9, %c0_9] : memref<12x128xf32, #tpu.memory_space<vmem>>, vector<1x128xf32>
    %c10 = arith.constant 10 : index
    %c0_10 = arith.constant 0 : index
    %10 = vector.load %arg2[%c10, %c0_10] : memref<12x128xf32, #tpu.memory_space<vmem>>, vector<1x128xf32>
    %c11 = arith.constant 11 : index
    %c0_11 = arith.constant 0 : index
    %11 = vector.load %arg2[%c11, %c0_11] : memref<12x128xf32, #tpu.memory_space<vmem>>, vector<1x128xf32>
    %c0_12 = arith.constant 0 : index
    %c0_13 = arith.constant 0 : index
    %c0_14 = arith.constant 0 : index
    %c0_15 = arith.constant 0 : index
    %12 = vector.load %arg3[%c0_12, %c0_13, %c0_14, %c0_15] : memref<1x3x2x128xf32, #tpu.memory_space<vmem>>, vector<1x1x2x128xf32>
    %13 = vector.shape_cast %12 : vector<1x1x2x128xf32> to vector<2x128xf32>
    %c0_16 = arith.constant 0 : index
    %c1_17 = arith.constant 1 : index
    %c0_18 = arith.constant 0 : index
    %c0_19 = arith.constant 0 : index
    %14 = vector.load %arg3[%c0_16, %c1_17, %c0_18, %c0_19] : memref<1x3x2x128xf32, #tpu.memory_space<vmem>>, vector<1x1x2x128xf32>
    %15 = vector.shape_cast %14 : vector<1x1x2x128xf32> to vector<2x128xf32>
    %c0_20 = arith.constant 0 : index
    %c2_21 = arith.constant 2 : index
    %c0_22 = arith.constant 0 : index
    %c0_23 = arith.constant 0 : index
    %16 = vector.load %arg3[%c0_20, %c2_21, %c0_22, %c0_23] : memref<1x3x2x128xf32, #tpu.memory_space<vmem>>, vector<1x1x2x128xf32>
    %17 = vector.shape_cast %16 : vector<1x1x2x128xf32> to vector<2x128xf32>
    %18 = vector.broadcast %0 : vector<1x128xf32> to vector<2x128xf32>
    %19 = arith.mulf %18, %13 : vector<2x128xf32>
    %20 = vector.broadcast %1 : vector<1x128xf32> to vector<2x128xf32>
    %21 = arith.mulf %20, %15 : vector<2x128xf32>
    %22 = arith.addf %19, %21 : vector<2x128xf32>
    %23 = vector.broadcast %2 : vector<1x128xf32> to vector<2x128xf32>
    %24 = arith.mulf %23, %17 : vector<2x128xf32>
    %25 = arith.addf %22, %24 : vector<2x128xf32>
    %26 = vector.broadcast %9 : vector<1x128xf32> to vector<2x128xf32>
    %27 = arith.addf %25, %26 : vector<2x128xf32>
    %c0_24 = arith.constant 0 : index
    %c0_25 = arith.constant 0 : index
    %c0_26 = arith.constant 0 : index
    %c0_27 = arith.constant 0 : index
    %28 = vector.load %arg4[%c0_24, %c0_25, %c0_26, %c0_27] : memref<1x3x2x128xf32, #tpu.memory_space<vmem>>, vector<1x1x2x128xf32>
    %29 = vector.shape_cast %28 : vector<1x1x2x128xf32> to vector<2x128xf32>
    %30 = vector.shape_cast %27 : vector<2x128xf32> to vector<1x1x2x128xf32>
    tpu.vector_store %arg4[%c0_24, %c0_25, %c0_26, %c0_27], %30 {strides = array<i32>} : memref<1x3x2x128xf32, #tpu.memory_space<vmem>>, vector<1x1x2x128xf32>,
    %31 = vector.broadcast %3 : vector<1x128xf32> to vector<2x128xf32>
    %32 = arith.mulf %31, %13 : vector<2x128xf32>
    %33 = vector.broadcast %4 : vector<1x128xf32> to vector<2x128xf32>
    %34 = arith.mulf %33, %15 : vector<2x128xf32>
    %35 = arith.addf %32, %34 : vector<2x128xf32>
    %36 = vector.broadcast %5 : vector<1x128xf32> to vector<2x128xf32>
    %37 = arith.mulf %36, %17 : vector<2x128xf32>
    %38 = arith.addf %35, %37 : vector<2x128xf32>
    %39 = vector.broadcast %10 : vector<1x128xf32> to vector<2x128xf32>
    %40 = arith.addf %38, %39 : vector<2x128xf32>
    %c0_28 = arith.constant 0 : index
    %c1_29 = arith.constant 1 : index
    %c0_30 = arith.constant 0 : index
    %c0_31 = arith.constant 0 : index
    %41 = vector.load %arg4[%c0_28, %c1_29, %c0_30, %c0_31] : memref<1x3x2x128xf32, #tpu.memory_space<vmem>>, vector<1x1x2x128xf32>
    %42 = vector.shape_cast %41 : vector<1x1x2x128xf32> to vector<2x128xf32>
    %43 = vector.shape_cast %40 : vector<2x128xf32> to vector<1x1x2x128xf32>
    tpu.vector_store %arg4[%c0_28, %c1_29, %c0_30, %c0_31], %43 {strides = array<i32>} : memref<1x3x2x128xf32, #tpu.memory_space<vmem>>, vector<1x1x2x128xf32>,
    %44 = vector.broadcast %6 : vector<1x128xf32> to vector<2x128xf32>
    %45 = arith.mulf %44, %13 : vector<2x128xf32>
    %46 = vector.broadcast %7 : vector<1x128xf32> to vector<2x128xf32>
    %47 = arith.mulf %46, %15 : vector<2x128xf32>
    %48 = arith.addf %45, %47 : vector<2x128xf32>
    %49 = vector.broadcast %8 : vector<1x128xf32> to vector<2x128xf32>
    %50 = arith.mulf %49, %17 : vector<2x128xf32>
    %51 = arith.addf %48, %50 : vector<2x128xf32>
    %52 = vector.broadcast %11 : vector<1x128xf32> to vector<2x128xf32>
    %53 = arith.addf %51, %52 : vector<2x128xf32>
    %c0_32 = arith.constant 0 : index
    %c2_33 = arith.constant 2 : index
    %c0_34 = arith.constant 0 : index
    %c0_35 = arith.constant 0 : index
    %54 = vector.load %arg4[%c0_32, %c2_33, %c0_34, %c0_35] : memref<1x3x2x128xf32, #tpu.memory_space<vmem>>, vector<1x1x2x128xf32>
    %55 = vector.shape_cast %54 : vector<1x1x2x128xf32> to vector<2x128xf32>
    %56 = vector.shape_cast %53 : vector<2x128xf32> to vector<1x1x2x128xf32>
    tpu.vector_store %arg4[%c0_32, %c2_33, %c0_34, %c0_35], %56 {strides = array<i32>} : memref<1x3x2x128xf32, #tpu.memory_space<vmem>>, vector<1x1x2x128xf32>,
    return
  }
  func.func @transform_0(%arg0: i32, %arg1: i32) -> (i32, i32) {
    %c0_i32 = arith.constant 0 : i32
    %c0_i32_0 = arith.constant 0 : i32
    %c0_i32_1 = arith.constant 0 : i32
    return %c0_i32, %c0_i32_0 : i32, i32
  }
  func.func @transform_1(%arg0: i32, %arg1: i32) -> (i32, i32, i32, i32) {
    %c0_i32 = arith.constant 0 : i32
    %c0_i32_0 = arith.constant 0 : i32
    %c0_i32_1 = arith.constant 0 : i32
    return %arg0, %c0_i32, %arg1, %c0_i32_0 : i32, i32, i32, i32
  }
  func.func @transform_2(%arg0: i32, %arg1: i32) -> (i32, i32, i32, i32) {
    %c0_i32 = arith.constant 0 : i32
    %c0_i32_0 = arith.constant 0 : i32
    %c0_i32_1 = arith.constant 0 : i32
    return %arg0, %c0_i32, %arg1, %c0_i32_0 : i32, i32, i32, i32
  }
}

</mosaic_0001>

<bundles_post_ra>
// kernel: rgb2yuv_layer.2
= control target key start
LH: loop header
LB: loop body
LE: loop exit
PB: predicated region body
PF: predicated region fallthrough
CT: control target
= control target key end

     0   :  { %s400_s6 = smov 0   ;;  %s402_s7 = smov 0   ;;  %s455_s0 = inlined_call_operand.vmem [shape: f32[2,3,2,128], index: 0, kind: input, shape index: {}]   ;;  %s456_s1 = inlined_call_operand.vmem [shape: f32[2,8,128], index: 1, kind: output, shape index: {}]  }
   0x1   :  { %s404_s8 = smov 0  }
   0x2 LB: > { %s23_s9 = sadd.s32 1, %s384_s7  ;;  %p334_p0 = scmp.ge.s32.totalorder %s388_s8, 1  ;;  %s388_s8 = sphi %s404_s8, %s11_s8   ;;  %s384_s7 = sphi %s402_s7, %s458_s7   ;;  %s380_s6 = sphi %s400_s6, %s457_s6  }
   0x3   : > { %p25_p1 = scmp.ge.s32.totalorder %s23_s9, 2  ;;  %p104_p2 = scmp.lt.s32.totalorder %s388_s8, 3 }
   0x5   : > { %s460_s9 = smov (%p25_p1, %s23_s9), 0  ;;  %p105_p3 = pnand %p334_p0, %p104_p2 }
   0x6   : > { %p126_p4 = scmp.lt.s32.totalorder (!%p105_p3), %s380_s6, 1  ;;  %vm145_vm0 = vcmask (!%p105_p3), 1041408  }
   0x7   : > { %108 = sbr.rel (%p105_p3) target bundleno = 46 (0x2e), region = 24 }
   0xe   : > { %s462_s6 = smov (!%p126_p4, %s380_s6), 1 }
   0xf   : > { %s341_s10 = smul.u32 6, %s462_s6  ;;  %s336_s14 = sshll.u32 %s462_s6, 3 }
  0x10   : > { %s436_s17 = scalar_lea.vmem %s456_s1, %s336_s14 }
  0x11   : > { %s133_s13 = scalar_lea.vmem %s455_s0, %s341_s10 }
  0x12   : > { %v138_v0 = vld [vmem:[%s133_s13] sm:$0x3]  ;;  %v337_v1 = vld [vmem:[%s133_s13 + $0x2] sm:$0x3]  ;;  %v338_v2 = vld [vmem:[%s133_s13 + $0x4] sm:$0x3] }
  0x13   : > { %v143_v3 = vmin.f32 %v138_v0, %v337_v1  ;;  %v153_v4 = vmax.f32 %v138_v0, %v337_v1  ;;  %v163_v5 = vmul.f32 0.299, %v138_v0  ;;  %v164_v6 = vmul.f32 0.587, %v337_v1 }
  0x14   : > { %v166_v7 = vmul.f32 0.114, %v338_v2  ;;  %v183_v8 = vmul.f32 -0.14713, %v138_v0  ;;  %v184_v9 = vmul.f32 -0.28886, %v337_v1 }
  0x15   : > { %v144_v10 = vmin.f32 %v143_v3, %v338_v2  ;;  %v154_v11 = vmax.f32 %v153_v4, %v338_v2  ;;  %v165_v12 = vadd.f32 %v164_v6, %v163_v5  ;;  %v186_v13 = vmul.f32 0.436, %v338_v2 }
  0x16   : > { %v185_v14 = vadd.f32 %v184_v9, %v183_v8  ;;  %v203_v15 = vmul.f32 0.615, %v138_v0  ;;  %v204_v16 = vmul.f32 -0.51499, %v337_v1  ;;  %v206_v20 = vmul.f32 -0.10001, %v338_v2 }
  0x17   : > { %v146_v17 = vsel %vm145_vm0, %v144_v10, inf  ;;  %v155_v18 = vsel %vm145_vm0, %v154_v11, -inf  ;;  %v167_v19 = vadd.f32 %v166_v7, %v165_v12 }
  0x18   : > { %v147_v21 = vrot.slane %v146_v17, 4  ;;  %v156_v22 = vrot.slane %v155_v18, 4  ;;  %v187_v23 = vadd.f32 %v186_v13, %v185_v14  ;;  %v205_v24 = vadd.f32 %v204_v16, %v203_v15 }
  0x19   : > { %v168_v25 = vsel %vm145_vm0, %v167_v19, inf  ;;  %v175_v26 = vsel %vm145_vm0, %v167_v19, -inf }
  0x1a   : > { %v148_v27 = vmin.f32 %v146_v17, %v147_v21  ;;  %v157_v28 = vmax.f32 %v155_v18, %v156_v22  ;;  %v169_v29 = vrot.slane %v168_v25, 4  ;;  %v176_v30 = vrot.slane %v175_v26, 4 }
  0x1b   : > { %v188_v31 = vsel %vm145_vm0, %v187_v23, inf  ;;  %v195_v32 = vsel %vm145_vm0, %v187_v23, -inf  ;;  %v207_v33 = vadd.f32 %v206_v20, %v205_v24 }
  0x1c   : > { %v149_v34 = vrot.slane %v148_v27, 2  ;;  %v158_v35 = vrot.slane %v157_v28, 2  ;;  %v170_v36 = vmin.f32 %v168_v25, %v169_v29  ;;  %v177_v37 = vmax.f32 %v175_v26, %v176_v30 }
  0x1d   : > { %v189_v38 = vrot.slane %v188_v31, 4  ;;  %v196_v39 = vrot.slane %v195_v32, 4  ;;  %v208_v40 = vsel %vm145_vm0, %v207_v33, inf  ;;  %v215_v41 = vsel %vm145_vm0, %v207_v33, -inf }
  0x1e   : > { %v150_v42 = vmin.f32 %v148_v27, %v149_v34  ;;  %v159_v43 = vmax.f32 %v157_v28, %v158_v35  ;;  %v171_v44 = vrot.slane %v170_v36, 2  ;;  %v178_v45 = vrot.slane %v177_v37, 2 }
  0x1f   : > { %v190_v46 = vmin.f32 %v188_v31, %v189_v38  ;;  %v197_v47 = vmax.f32 %v195_v32, %v196_v39  ;;  %v209_v48 = vrot.slane %v208_v40, 4  ;;  %v216_v49 = vrot.slane %v215_v41, 4 }
  0x20   : > { %v151_v50 = vrot.slane %v150_v42, 1  ;;  %v160_v51 = vrot.slane %v159_v43, 1  ;;  %v172_v52 = vmin.f32 %v170_v36, %v171_v44  ;;  %v179_v53 = vmax.f32 %v177_v37, %v178_v45 }
  0x21   : > { %v191_v54 = vrot.slane %v190_v46, 2  ;;  %v198_v55 = vrot.slane %v197_v47, 2  ;;  %v210_v56 = vmin.f32 %v208_v40, %v209_v48  ;;  %v217_v57 = vmax.f32 %v215_v41, %v216_v49 }
  0x22   : > { %v152_v58 = vmin.f32 %v150_v42, %v151_v50  ;;  %v161_v59 = vmax.f32 %v159_v43, %v160_v51  ;;  %v173_v60 = vrot.slane %v172_v52, 1  ;;  %v180_v61 = vrot.slane %v179_v53, 1 }
  0x23   : > { %v192_v62 = vmin.f32 %v190_v46, %v191_v54  ;;  %v199_v63 = vmax.f32 %v197_v47, %v198_v55  ;;  %v211_v0 = vrot.slane %v210_v56, 2  ;;  %v218_v1 = vrot.slane %v217_v57, 2 }
  0x24   : > { %227 = vst [vmem:[%s436_s17] sm:$0x1] %v152_v58  ;;  %v162_v2 = vsub.f32 0.0, %v161_v59  ;;  %v174_v3 = vmin.f32 %v172_v52, %v173_v60  ;;  %v181_v4 = vmax.f32 %v179_v53, %v180_v61 }
  0x25   : > { %v193_v5 = vrot.slane %v192_v62, 1  ;;  %v200_v6 = vrot.slane %v199_v63, 1  ;;  %v212_v7 = vmin.f32 %v210_v56, %v211_v0  ;;  %v219_v8 = vmax.f32 %v217_v57, %v218_v1 }
  0x26   : > { %228 = vst [vmem:[%s436_s17 + $0x1] sm:$0x1] %v162_v2  ;;  %229 = vst [vmem:[%s436_s17 + $0x2] sm:$0x1] %v174_v3  ;;  %v182_v9 = vsub.f32 0.0, %v181_v4 }
  0x27   : > { %v194_v10 = vmin.f32 %v192_v62, %v193_v5  ;;  %v201_v11 = vmax.f32 %v199_v63, %v200_v6  ;;  %v213_v12 = vrot.slane %v212_v7, 1  ;;  %v220_v13 = vrot.slane %v219_v8, 1 }
  0x28   : > { %230 = vst [vmem:[%s436_s17 + $0x3] sm:$0x1] %v182_v9 }
  0x29   : > { %231 = vst [vmem:[%s436_s17 + $0x4] sm:$0x1] %v194_v10  ;;  %v202_v14 = vsub.f32 0.0, %v201_v11  ;;  %v214_v15 = vmin.f32 %v212_v7, %v213_v12  ;;  %v221_v16 = vmax.f32 %v219_v8, %v220_v13 }
  0x2b   : > { %232 = vst [vmem:[%s436_s17 + $0x5] sm:$0x1] %v202_v14  ;;  %233 = vst [vmem:[%s436_s17 + $0x6] sm:$0x1] %v214_v15  ;;  %v222_v17 = vsub.f32 0.0, %v221_v16 }
  0x2d   : > { %234 = vst [vmem:[%s436_s17 + $0x7] sm:$0x1] %v222_v17 }
  0x2e PF: > { %s11_s8 = sadd.s32 1, %s388_s8   ;;  %s457_s6 = smov %s384_s7 }
  0x2f   : > { %p8_p5 = scmp.ge.s32.totalorder %s11_s8, 4   ;;  %s458_s7 = smov %s460_s9 }
  0x31   :  { %10 = sbr.rel (!%p8_p5) target bundleno = 2 (0x2), region = 64 }

// kernel: rgb2yuv_layer.3
= control target key start
LH: loop header
LB: loop body
LE: loop exit
PB: predicated region body
PF: predicated region fallthrough
CT: control target
= control target key end

     0   :  { %s435_s9 = smov 0   ;;  %s437_s10 = smov 0   ;;  %s511_s0 = inlined_call_operand.vmem [shape: f32[12,128], index: 0, kind: input, shape index: {}]   ;;  %s512_s1 = inlined_call_operand.vmem [shape: f32[2,3,2,128], index: 1, kind: input, shape index: {}]   ;;  %s513_s2 = inlined_call_operand.vmem [shape: f32[2,3,2,128], index: 2, kind: output, shape index: {}]  }
   0x1   :  { %s439_s11 = smov 0  }
   0x2 LB: > { %s24_s12 = sadd.s32 1, %s414_s10  ;;  %p350_p0 = scmp.ge.s32.totalorder %s418_s11, 1  ;;  %s418_s11 = sphi %s439_s11, %s12_s11   ;;  %s414_s10 = sphi %s437_s10, %s515_s10   ;;  %s410_s9 = sphi %s435_s9, %s514_s9  }
   0x3   : > { %p26_p1 = scmp.ge.s32.totalorder %s24_s12, 2  ;;  %p131_p2 = scmp.lt.s32.totalorder %s418_s11, 3 }
   0x5   : > { %s517_s12 = smov (%p26_p1, %s24_s12), 0  ;;  %p132_p3 = pnand %p350_p0, %p131_p2 }
   0x6   : > { %p159_p4 = scmp.lt.s32.totalorder (!%p132_p3), %s410_s9, 1  ;;  %v355_v0 = vld [vmem:[%s511_s0] ss:$0 sm:$0xff] (!%p132_p3)  ;;  %v356_v1 = vld [vmem:[%s511_s0 + $0x1] ss:$0 sm:$0xff] (!%p132_p3) }
   0x7   : > { %135 = sbr.rel (%p132_p3) target bundleno = 29 (0x1d), region = 28  ;;  %v357_v2 = vld [vmem:[%s511_s0 + $0x2] ss:$0 sm:$0xff] (!%p132_p3)  ;;  %v359_v3 = vld [vmem:[%s511_s0 + $0x3] ss:$0 sm:$0xff] (!%p132_p3) }
   0x8   : > { %v360_v4 = vld [vmem:[%s511_s0 + $0x4] ss:$0 sm:$0xff] (!%p132_p3)  ;;  %v361_v5 = vld [vmem:[%s511_s0 + $0x5] ss:$0 sm:$0xff] (!%p132_p3)  ;;  %v364_v6 = vld [vmem:[%s511_s0 + $0x6] ss:$0 sm:$0xff] (!%p132_p3) }
   0x9   : > { %v365_v7 = vld [vmem:[%s511_s0 + $0x7] ss:$0 sm:$0xff] (!%p132_p3)  ;;  %v366_v8 = vld [vmem:[%s511_s0 + $0x8] ss:$0 sm:$0xff] (!%p132_p3)  ;;  %v358_v22 = vld [vmem:[%s511_s0 + $0x9] ss:$0 sm:$0xff] (!%p132_p3) }
   0xa   : > { %v362_v26 = vld [vmem:[%s511_s0 + $0xa] ss:$0 sm:$0xff] (!%p132_p3)  ;;  %v367_v27 = vld [vmem:[%s511_s0 + $0xb] ss:$0 sm:$0xff] (!%p132_p3) }
   0xe   : > { %s519_s9 = smov (!%p159_p4, %s410_s9), 1 }
   0xf   : > { %s371_s15 = smul.u32 6, %s519_s9 }
  0x11   : > { %s166_s28 = scalar_lea.vmem %s512_s1, %s371_s15  ;;  %s174_s20 = scalar_lea.vmem %s513_s2, %s371_s15 }
  0x12   : > { %v187_v9 = vld [vmem:[%s166_s28] sm:$0x3]  ;;  %v353_v10 = vld [vmem:[%s166_s28 + $0x2] sm:$0x3]  ;;  %v354_v11 = vld [vmem:[%s166_s28 + $0x4] sm:$0x3] }
  0x13   : > { %v196_v12 = vmul.f32 %v355_v0, %v187_v9  ;;  %v201_v13 = vmul.f32 %v356_v1, %v353_v10  ;;  %v207_v14 = vmul.f32 %v357_v2, %v354_v11  ;;  %v219_v15 = vmul.f32 %v359_v3, %v187_v9 }
  0x14   : > { %v224_v16 = vmul.f32 %v360_v4, %v353_v10  ;;  %v230_v17 = vmul.f32 %v361_v5, %v354_v11  ;;  %v243_v18 = vmul.f32 %v364_v6, %v187_v9  ;;  %v248_v19 = vmul.f32 %v365_v7, %v353_v10 }
  0x15   : > { %v202_v20 = vadd.f32 %v201_v13, %v196_v12  ;;  %v254_v21 = vmul.f32 %v366_v8, %v354_v11 }
  0x16   : > { %v225_v23 = vadd.f32 %v224_v16, %v219_v15  ;;  %v249_v24 = vadd.f32 %v248_v19, %v243_v18 }
  0x17   : > { %v208_v25 = vadd.f32 %v207_v14, %v202_v20 }
  0x18   : > { %v231_v28 = vadd.f32 %v230_v17, %v225_v23  ;;  %v255_v29 = vadd.f32 %v254_v21, %v249_v24 }
  0x19   : > { %v213_v30 = vadd.f32 %v358_v22, %v208_v25 }
  0x1a   : > { %v236_v31 = vadd.f32 %v362_v26, %v231_v28  ;;  %v260_v32 = vadd.f32 %v367_v27, %v255_v29 }
  0x1b   : > { %214 = vst [vmem:[%s174_s20] sm:$0x3] %v213_v30 }
  0x1c   : > { %363 = vst [vmem:[%s174_s20 + $0x2] sm:$0x3] %v236_v31  ;;  %368 = vst [vmem:[%s174_s20 + $0x4] sm:$0x3] %v260_v32 }
  0x1d PF: > { %s12_s11 = sadd.s32 1, %s418_s11   ;;  %s514_s9 = smov %s414_s10 }
  0x1e   : > { %p9_p5 = scmp.ge.s32.totalorder %s12_s11, 4   ;;  %s515_s10 = smov %s517_s12 }
  0x20   :  { %11 = sbr.rel (!%p9_p5) target bundleno = 2 (0x2), region = 62 }

</bundles_post_ra>
